<compile_context>
chip_gen: v5e
topology: v5e:2x2
jax: 0.10.0
libtpu: 0.0.40
codegen_flags: <defaults>
</compile_context>

<pallas_src>
import functools

import jax
import jax.numpy as jnp
import numpy as np
from jax.experimental import pallas as pl
from jax.experimental.pallas import tpu as pltpu

TASK_WEIGHTS = {1: 0.1, 2: 0.2, 3: 0.3, 4: 0.4}
CONSISTENCY_WEIGHT = 0.1


def _round_up(x, m):
    return ((x + m - 1) // m) * m


def _fused_loss_kernel(*refs, level_info, batch_size, tile_rows, tiles_per_split):
    """One batch tile of CE-sum / correct-count / entropy-sum, accumulated into
    the resident (8, 128) output block (raw sums, lane-packed in sublane 0).

    refs = (logits_ref_per_level..., targets_ref, out_ref)
    out lanes (sublane 0):  1..4 -> ce_sum, 5..8 -> correct_count, 9 -> ent_sum
    """
    n_levels = len(level_info)
    logit_refs = refs[:n_levels]
    tgt_ref = refs[n_levels]
    out_ref = refs[n_levels + 1]

    j = pl.program_id(1)

    @pl.when(j == 0)
    def _init():
        out_ref[...] = jnp.zeros_like(out_ref)

    # Global row ids of this tile; rows past the batch (ragged last tile or a
    # phantom tile of an uneven split) are masked out of every sum.
    tile = pl.program_id(0) * tiles_per_split + j
    row_ids = tile * tile_rows + jax.lax.broadcasted_iota(
        jnp.int32, (tile_rows, 1), 0)
    valid = row_ids < batch_size                               # [TB, 1] bool

    lane = jax.lax.broadcasted_iota(jnp.int32, (1, 128), 1)
    contrib = jnp.zeros((1, 128), jnp.float32)
    ent_sum = jnp.zeros((1, 1), jnp.float32)

    tgt_all = tgt_ref[...]                                     # [TB, n_ce] i32

    # Static (fully unrolled) loop over the levels actually present.
    for (level, need_ce, need_ent, tgt_col), lref in zip(level_info, logit_refs):
        logits = lref[...].astype(jnp.float32)                 # [TB, C]
        TB, C = logits.shape

        # logsumexp over the class (lane) axis; reused by CE and entropy.
        m = jnp.max(logits, axis=1, keepdims=True)             # [TB, 1]
        ex = jnp.exp(logits - m)                               # [TB, C]
        se = jnp.sum(ex, axis=1, keepdims=True)                # [TB, 1]
        lse = jnp.log(se) + m                                  # [TB, 1]

        if need_ce:
            tgt = tgt_all[:, tgt_col:tgt_col + 1]              # [TB, 1]
            col = jax.lax.broadcasted_iota(jnp.int32, (TB, C), 1)
            # single-select gather of the target logit (no onehot multiply)
            tgt_logit = jnp.sum(jnp.where(col == tgt, logits, 0.0),
                                axis=1, keepdims=True)
            ce_sum = jnp.sum(jnp.where(valid, lse - tgt_logit, 0.0),
                             keepdims=True)                    # (1, 1)
            # correct iff the target logit equals the row max (ties ~never
            # occur for continuous float logits)
            correct = jnp.logical_and(valid, tgt_logit >= m)
            acc_sum = jnp.sum(jnp.where(correct, 1.0, 0.0), keepdims=True)
            contrib = jnp.where(lane == level, ce_sum, contrib)       # 1..4
            contrib = jnp.where(lane == 4 + level, acc_sum, contrib)  # 5..8

        if need_ent:
            # entropy = lse - sum(ex*logits)/se  (reference adds +1e-8 inside
            # the log; difference is ~1e-8-level)
            ent = lse - jnp.sum(ex * logits, axis=1, keepdims=True) / se
            ent_sum = ent_sum + jnp.sum(jnp.where(valid, ent, 0.0),
                                        keepdims=True)

    contrib = jnp.where(lane == 9, ent_sum, contrib)
    sub = jax.lax.broadcasted_iota(jnp.int32, (8, 128), 0)
    out_ref[...] = out_ref[...] + jnp.where(sub == 0, contrib, 0.0)


def multi_task_hierarchical_loss(level_logits, level_targets, target_codes=None,
                                 task_weights=None,
                                 consistency_weight=CONSISTENCY_WEIGHT):
    """JAX/Pallas equivalent of MultiTaskHierarchicalLoss.forward."""
    task_weights = dict(task_weights or TASK_WEIGHTS)

    # Static description of what each present level needs.
    level_info = []          # (level, need_ce, need_ent, tgt_col)
    tgt_cols = []
    for level in [1, 2, 3, 4]:
        key = f"level_{level}"
        has_logits = key in level_logits
        need_ce = has_logits and key in level_targets
        # module adds level-l entropy only when level_{l+1} logits also exist
        need_ent = (has_logits and level <= 3
                    and f"level_{level + 1}" in level_logits)
        if not (need_ce or need_ent):
            continue
        tgt_col = len(tgt_cols)
        if need_ce:
            tgt_cols.append(level_targets[key].astype(jnp.int32))
        level_info.append((level, need_ce, need_ent, tgt_col))

    if not level_info:
        zero = jnp.float32(0.0)
        return {"total_loss": zero, "level_losses": {},
                "consistency_loss": zero, "level_accuracies": {}}

    logits_list = [level_logits[f"level_{lvl}"] for (lvl, _, _, _) in level_info]
    B = int(logits_list[0].shape[0])
    targets = (jnp.stack(tgt_cols, axis=1) if tgt_cols
               else jnp.zeros((B, 1), jnp.int32))               # [B, n_ce]

    # ---------------- batch tiling ----------------------------------------
    any_bf16 = any(lg.dtype == jnp.bfloat16 for lg in logits_list)
    sublane = 16 if any_bf16 else 8
    tile_rows = min(1024, _round_up(B, sublane))
    num_tiles = -(-B // tile_rows)
    # Split batch tiles across two output partials: megacore-parallel on 2-TC
    # chips (v7x), harmless serial elsewhere.
    nsplit = 2 if num_tiles >= 2 else 1
    tps = -(-num_tiles // nsplit)
    max_tile = num_tiles - 1
    needs_clamp = nsplit * tps > num_tiles

    if needs_clamp:
        # Phantom tiles re-read the last valid tile; their rows are masked out
        # in-kernel by the global row-index check.
        def row_map(s, j):
            return (jnp.minimum(s * tps + j, max_tile), 0)
    else:
        def row_map(s, j):
            return (s * tps + j, 0)

    in_specs = [pl.BlockSpec((tile_rows, int(lg.shape[1])), row_map)
                for lg in logits_list]
    in_specs.append(pl.BlockSpec((tile_rows, int(targets.shape[1])), row_map))
    out_specs = pl.BlockSpec((8, 128), lambda s, j: (s, 0))

    kernel = functools.partial(
        _fused_loss_kernel,
        level_info=tuple(level_info),
        batch_size=B,
        tile_rows=tile_rows,
        tiles_per_split=tps,
    )

    total_elems = sum(int(np.prod(lg.shape)) for lg in logits_list)
    in_bytes = sum(int(lg.size) * lg.dtype.itemsize for lg in logits_list)
    cost = pl.CostEstimate(
        flops=int(8 * total_elems),
        transcendentals=int(total_elems),
        bytes_accessed=int(in_bytes + 4 * targets.size + 4 * nsplit * 8 * 128),
    )

    partials = pl.pallas_call(
        kernel,
        out_shape=jax.ShapeDtypeStruct((nsplit * 8, 128), jnp.float32),
        grid=(nsplit, tps),
        in_specs=in_specs,
        out_specs=out_specs,
        compiler_params=pltpu.CompilerParams(
            dimension_semantics=("parallel", "arbitrary")),
        cost_estimate=cost,
    )(*logits_list, targets)

    # ---------------- tiny finalize (cross-split reduce + scaling) --------
    sums = jnp.sum(partials, axis=0)            # (128,) raw sums
    inv_b = 1.0 / float(B)

    total = jnp.float32(0.0)
    level_losses = {}
    level_accuracies = {}
    for (level, need_ce, _, _) in level_info:
        if need_ce:
            key = f"level_{level}"
            ce = sums[level] * inv_b
            acc = sums[4 + level] * inv_b
            level_losses[key] = ce
            level_accuracies[f"{key}_acc"] = acc
            total = total + jnp.float32(task_weights[level]) * ce
    cons = sums[9] * jnp.float32(0.01 * inv_b)
    total = total + jnp.float32(consistency_weight) * cons

    return {
        "total_loss": total,
        "level_losses": level_losses,
        "consistency_loss": cons,
        "level_accuracies": level_accuracies,
    }


def _reference(level_logits, level_targets):
    """Pure-JAX reference, mirroring the PyTorch forward semantics."""
    total = jnp.float32(0.0)
    cons = jnp.float32(0.0)
    losses, accs = {}, {}
    for level in [1, 2, 3, 4]:
        key = f"level_{level}"
        lg = level_logits[key].astype(jnp.float32)
        tg = level_targets[key]
        logp = jax.nn.log_softmax(lg, axis=1)
        ce = -jnp.take_along_axis(logp, tg[:, None], axis=1).mean()
        losses[key] = ce
        accs[key] = (jnp.argmax(lg, axis=1) == tg).astype(jnp.float32).mean()
        total = total + TASK_WEIGHTS[level] * ce
        if level <= 3:
            p = jax.nn.softmax(lg, axis=1)
            cons = cons + (-(p * jnp.log(p + 1e-8)).sum(axis=1).mean()) * 0.01
    total = total + CONSISTENCY_WEIGHT * cons
    return total, losses, accs, cons


if __name__ == "__main__":
    key = jax.random.PRNGKey(0)
    batch = 8
    num_classes = {1: 10, 2: 24, 3: 40, 4: 100}

    level_logits = {}
    level_targets = {}
    for level in [1, 2, 3, 4]:
        key, k1, k2 = jax.random.split(key, 3)
        c = num_classes[level]
        level_logits[f"level_{level}"] = jax.random.normal(k1, (batch, c), jnp.float32)
        level_targets[f"level_{level}"] = jax.random.randint(k2, (batch,), 0, c, jnp.int32)

    # target_codes are unused by the forward pass; pass placeholders for parity
    target_codes = ["1234"] * batch

    out = multi_task_hierarchical_loss(level_logits, level_targets, target_codes)
    jax.block_until_ready(out["total_loss"])

    ref_total, ref_losses, ref_accs, ref_cons = _reference(level_logits, level_targets)

    np.testing.assert_allclose(np.asarray(out["total_loss"]),
                               np.asarray(ref_total), rtol=1e-4, atol=1e-5)
    for level in [1, 2, 3, 4]:
        k = f"level_{level}"
        np.testing.assert_allclose(np.asarray(out["level_losses"][k]),
                                   np.asarray(ref_losses[k]), rtol=1e-4, atol=1e-5)
        np.testing.assert_allclose(np.asarray(out["level_accuracies"][f"{k}_acc"]),
                                   np.asarray(ref_accs[k]), rtol=1e-5, atol=1e-6)
    # exact divide now used for the entropy denominator; only the reference's
    # +1e-8 epsilon (~1e-8-level) differs
    np.testing.assert_allclose(np.asarray(out["consistency_loss"]),
                               np.asarray(ref_cons), rtol=1e-4, atol=1e-5)

    print("KERNEL_OK")
</pallas_src>

<mosaic_0001>
module attributes {stable_mosaic.version = 11 : i64} {
  func.func @_fused_loss_kernel(%arg0: i32, %arg1: i32, %arg2: memref<8x10xf32, #tpu.memory_space<vmem>>, %arg3: memref<8x24xf32, #tpu.memory_space<vmem>>, %arg4: memref<8x40xf32, #tpu.memory_space<vmem>>, %arg5: memref<8x100xf32, #tpu.memory_space<vmem>>, %arg6: memref<8x4xi32, #tpu.memory_space<vmem>>, %arg7: memref<8x128xf32, #tpu.memory_space<vmem>>) attributes {dimension_semantics = [#tpu.dimension_semantics<parallel>, #tpu.dimension_semantics<arbitrary>], iteration_bounds = array<i64: 1, 1>, scalar_prefetch = 0 : i64, scratch_operands = 0 : i64, tpu.core_type = #tpu.core_type<tc>, window_params = [{transform_indices = @transform_0, window_bounds = array<i64: 8, 10>}, {transform_indices = @transform_1, window_bounds = array<i64: 8, 24>}, {transform_indices = @transform_2, window_bounds = array<i64: 8, 40>}, {transform_indices = @transform_3, window_bounds = array<i64: 8, 100>}, {transform_indices = @transform_4, window_bounds = array<i64: 8, 4>}, {transform_indices = @transform_5, window_bounds = array<i64: 8, 128>}]} {
    %c0_i32 = arith.constant 0 : i32
    %0 = arith.cmpi eq, %arg1, %c0_i32 : i32
    %1 = arith.extui %0 : i1 to i32
    %c0_i32_0 = arith.constant 0 : i32
    %2 = arith.cmpi ne, %1, %c0_i32_0 : i32
    scf.if %2 {
      %cst_65 = arith.constant 0.000000e+00 : f32
      %253 = vector.broadcast %cst_65 : f32 to vector<8x128xf32>
      %c0_66 = arith.constant 0 : index
      %c0_67 = arith.constant 0 : index
      %254 = vector.load %arg7[%c0_66, %c0_67] : memref<8x128xf32, #tpu.memory_space<vmem>>, vector<8x128xf32>
      tpu.vector_store %arg7[%c0_66, %c0_67], %253 {strides = array<i32>} : memref<8x128xf32, #tpu.memory_space<vmem>>, vector<8x128xf32>,
    } else {
    }
    %c1_i32 = arith.constant 1 : i32
    %3 = arith.muli %arg0, %c1_i32 : i32
    %4 = arith.addi %3, %arg1 : i32
    %c8_i32 = arith.constant 8 : i32
    %5 = arith.muli %4, %c8_i32 : i32
    %6 = tpu.iota {dimensions = array<i32: 0>} : vector<8x1xi32>
    %7 = vector.broadcast %5 : i32 to vector<8x1xi32>
    %8 = arith.addi %7, %6 : vector<8x1xi32>
    %c8_i32_1 = arith.constant 8 : i32
    %9 = vector.broadcast %c8_i32_1 : i32 to vector<8x1xi32>
    %10 = arith.cmpi slt, %8, %9 : vector<8x1xi32>
    %11 = tpu.iota {dimensions = array<i32: 1>} : vector<1x128xi32>
    %cst = arith.constant 0.000000e+00 : f32
    %12 = vector.broadcast %cst : f32 to vector<1x128xf32>
    %cst_2 = arith.constant 0.000000e+00 : f32
    %13 = vector.broadcast %cst_2 : f32 to vector<1x1xf32>
    %c0 = arith.constant 0 : index
    %c0_3 = arith.constant 0 : index
    %14 = vector.load %arg6[%c0, %c0_3] : memref<8x4xi32, #tpu.memory_space<vmem>>, vector<8x4xi32>
    %c0_4 = arith.constant 0 : index
    %c0_5 = arith.constant 0 : index
    %15 = vector.load %arg2[%c0_4, %c0_5] : memref<8x10xf32, #tpu.memory_space<vmem>>, vector<8x10xf32>
    %cst_6 = arith.constant dense<0xFF800000> : vector<8xf32>
    %16 = vector.multi_reduction <maximumf>, %15, %cst_6 [1] : vector<8x10xf32> to vector<8xf32>
    %17 = vector.shape_cast %16 : vector<8xf32> to vector<8x1xf32>
    %18 = vector.broadcast %17 : vector<8x1xf32> to vector<8x10xf32>
    %19 = arith.subf %15, %18 : vector<8x10xf32>
    %20 = math.exp %19 : vector<8x10xf32>
    %cst_7 = arith.constant dense<0.000000e+00> : vector<8xf32>
    %21 = vector.multi_reduction <add>, %20, %cst_7 [1] : vector<8x10xf32> to vector<8xf32>
    %22 = vector.shape_cast %21 : vector<8xf32> to vector<8x1xf32>
    %23 = math.log %22 : vector<8x1xf32>
    %24 = arith.addf %23, %17 : vector<8x1xf32>
    %25 = vector.extract_strided_slice %14 {offsets = [0, 0], sizes = [8, 1], strides = [1, 1]} : vector<8x4xi32> to vector<8x1xi32>
    %26 = tpu.iota {dimensions = array<i32: 1>} : vector<8x10xi32>
    %27 = vector.broadcast %25 : vector<8x1xi32> to vector<8x10xi32>
    %28 = arith.cmpi eq, %26, %27 : vector<8x10xi32>
    %cst_8 = arith.constant 0.000000e+00 : f32
    %29 = vector.broadcast %cst_8 : f32 to vector<8x10xf32>
    %30 = arith.select %28, %15, %29 : vector<8x10xi1>, vector<8x10xf32>
    %cst_9 = arith.constant dense<0.000000e+00> : vector<8xf32>
    %31 = vector.multi_reduction <add>, %30, %cst_9 [1] : vector<8x10xf32> to vector<8xf32>
    %32 = vector.shape_cast %31 : vector<8xf32> to vector<8x1xf32>
    %33 = arith.subf %24, %32 : vector<8x1xf32>
    %cst_10 = arith.constant 0.000000e+00 : f32
    %34 = vector.broadcast %cst_10 : f32 to vector<8x1xf32>
    %35 = arith.select %10, %33, %34 : vector<8x1xi1>, vector<8x1xf32>
    %36 = vector.shape_cast %35 : vector<8x1xf32> to vector<1x8x1xf32>
    %cst_11 = arith.constant dense<0.000000e+00> : vector<1xf32>
    %37 = vector.multi_reduction <add>, %36, %cst_11 [1, 2] : vector<1x8x1xf32> to vector<1xf32>
    %38 = vector.shape_cast %37 : vector<1xf32> to vector<1x1x1xf32>
    %39 = vector.extract %38[0, 0, 0] : f32 from vector<1x1x1xf32>
    %40 = vector.broadcast %39 : f32 to vector<1x1xf32>
    %41 = arith.cmpf oge, %32, %17 : vector<8x1xf32>
    %42 = arith.andi %10, %41 : vector<8x1xi1>
    %cst_12 = arith.constant 1.000000e+00 : f32
    %cst_13 = arith.constant 0.000000e+00 : f32
    %43 = vector.broadcast %cst_12 : f32 to vector<8x1xf32>
    %44 = vector.broadcast %cst_13 : f32 to vector<8x1xf32>
    %45 = arith.select %42, %43, %44 : vector<8x1xi1>, vector<8x1xf32>
    %46 = vector.shape_cast %45 : vector<8x1xf32> to vector<1x8x1xf32>
    %cst_14 = arith.constant dense<0.000000e+00> : vector<1xf32>
    %47 = vector.multi_reduction <add>, %46, %cst_14 [1, 2] : vector<1x8x1xf32> to vector<1xf32>
    %48 = vector.shape_cast %47 : vector<1xf32> to vector<1x1x1xf32>
    %49 = vector.extract %48[0, 0, 0] : f32 from vector<1x1x1xf32>
    %50 = vector.broadcast %49 : f32 to vector<1x1xf32>
    %c1_i32_15 = arith.constant 1 : i32
    %51 = vector.broadcast %c1_i32_15 : i32 to vector<1x128xi32>
    %52 = arith.cmpi eq, %11, %51 : vector<1x128xi32>
    %53 = vector.shape_cast %40 : vector<1x1xf32> to vector<1x1xf32>
    %54 = vector.broadcast %53 : vector<1x1xf32> to vector<1x128xf32>
    %55 = arith.select %52, %54, %12 : vector<1x128xi1>, vector<1x128xf32>
    %c5_i32 = arith.constant 5 : i32
    %56 = vector.broadcast %c5_i32 : i32 to vector<1x128xi32>
    %57 = arith.cmpi eq, %11, %56 : vector<1x128xi32>
    %58 = vector.shape_cast %50 : vector<1x1xf32> to vector<1x1xf32>
    %59 = vector.broadcast %58 : vector<1x1xf32> to vector<1x128xf32>
    %60 = arith.select %57, %59, %55 : vector<1x128xi1>, vector<1x128xf32>
    %61 = arith.mulf %20, %15 : vector<8x10xf32>
    %cst_16 = arith.constant dense<0.000000e+00> : vector<8xf32>
    %62 = vector.multi_reduction <add>, %61, %cst_16 [1] : vector<8x10xf32> to vector<8xf32>
    %63 = vector.shape_cast %62 : vector<8xf32> to vector<8x1xf32>
    %64 = arith.divf %63, %22 : vector<8x1xf32>
    %65 = arith.subf %24, %64 : vector<8x1xf32>
    %cst_17 = arith.constant 0.000000e+00 : f32
    %66 = vector.broadcast %cst_17 : f32 to vector<8x1xf32>
    %67 = arith.select %10, %65, %66 : vector<8x1xi1>, vector<8x1xf32>
    %68 = vector.shape_cast %67 : vector<8x1xf32> to vector<1x8x1xf32>
    %cst_18 = arith.constant dense<0.000000e+00> : vector<1xf32>
    %69 = vector.multi_reduction <add>, %68, %cst_18 [1, 2] : vector<1x8x1xf32> to vector<1xf32>
    %70 = vector.shape_cast %69 : vector<1xf32> to vector<1x1x1xf32>
    %71 = vector.extract %70[0, 0, 0] : f32 from vector<1x1x1xf32>
    %72 = vector.broadcast %71 : f32 to vector<1x1xf32>
    %73 = arith.addf %13, %72 : vector<1x1xf32>
    %c0_19 = arith.constant 0 : index
    %c0_20 = arith.constant 0 : index
    %74 = vector.load %arg3[%c0_19, %c0_20] : memref<8x24xf32, #tpu.memory_space<vmem>>, vector<8x24xf32>
    %cst_21 = arith.constant dense<0xFF800000> : vector<8xf32>
    %75 = vector.multi_reduction <maximumf>, %74, %cst_21 [1] : vector<8x24xf32> to vector<8xf32>
    %76 = vector.shape_cast %75 : vector<8xf32> to vector<8x1xf32>
    %77 = vector.broadcast %76 : vector<8x1xf32> to vector<8x24xf32>
    %78 = arith.subf %74, %77 : vector<8x24xf32>
    %79 = math.exp %78 : vector<8x24xf32>
    %cst_22 = arith.constant dense<0.000000e+00> : vector<8xf32>
    %80 = vector.multi_reduction <add>, %79, %cst_22 [1] : vector<8x24xf32> to vector<8xf32>
    %81 = vector.shape_cast %80 : vector<8xf32> to vector<8x1xf32>
    %82 = math.log %81 : vector<8x1xf32>
    %83 = arith.addf %82, %76 : vector<8x1xf32>
    %84 = vector.extract_strided_slice %14 {offsets = [0, 1], sizes = [8, 1], strides = [1, 1]} : vector<8x4xi32> to vector<8x1xi32>
    %85 = tpu.iota {dimensions = array<i32: 1>} : vector<8x24xi32>
    %86 = vector.broadcast %84 : vector<8x1xi32> to vector<8x24xi32>
    %87 = arith.cmpi eq, %85, %86 : vector<8x24xi32>
    %cst_23 = arith.constant 0.000000e+00 : f32
    %88 = vector.broadcast %cst_23 : f32 to vector<8x24xf32>
    %89 = arith.select %87, %74, %88 : vector<8x24xi1>, vector<8x24xf32>
    %cst_24 = arith.constant dense<0.000000e+00> : vector<8xf32>
    %90 = vector.multi_reduction <add>, %89, %cst_24 [1] : vector<8x24xf32> to vector<8xf32>
    %91 = vector.shape_cast %90 : vector<8xf32> to vector<8x1xf32>
    %92 = arith.subf %83, %91 : vector<8x1xf32>
    %cst_25 = arith.constant 0.000000e+00 : f32
    %93 = vector.broadcast %cst_25 : f32 to vector<8x1xf32>
    %94 = arith.select %10, %92, %93 : vector<8x1xi1>, vector<8x1xf32>
    %95 = vector.shape_cast %94 : vector<8x1xf32> to vector<1x8x1xf32>
    %cst_26 = arith.constant dense<0.000000e+00> : vector<1xf32>
    %96 = vector.multi_reduction <add>, %95, %cst_26 [1, 2] : vector<1x8x1xf32> to vector<1xf32>
    %97 = vector.shape_cast %96 : vector<1xf32> to vector<1x1x1xf32>
    %98 = vector.extract %97[0, 0, 0] : f32 from vector<1x1x1xf32>
    %99 = vector.broadcast %98 : f32 to vector<1x1xf32>
    %100 = arith.cmpf oge, %91, %76 : vector<8x1xf32>
    %101 = arith.andi %10, %100 : vector<8x1xi1>
    %cst_27 = arith.constant 1.000000e+00 : f32
    %cst_28 = arith.constant 0.000000e+00 : f32
    %102 = vector.broadcast %cst_27 : f32 to vector<8x1xf32>
    %103 = vector.broadcast %cst_28 : f32 to vector<8x1xf32>
    %104 = arith.select %101, %102, %103 : vector<8x1xi1>, vector<8x1xf32>
    %105 = vector.shape_cast %104 : vector<8x1xf32> to vector<1x8x1xf32>
    %cst_29 = arith.constant dense<0.000000e+00> : vector<1xf32>
    %106 = vector.multi_reduction <add>, %105, %cst_29 [1, 2] : vector<1x8x1xf32> to vector<1xf32>
    %107 = vector.shape_cast %106 : vector<1xf32> to vector<1x1x1xf32>
    %108 = vector.extract %107[0, 0, 0] : f32 from vector<1x1x1xf32>
    %109 = vector.broadcast %108 : f32 to vector<1x1xf32>
    %c2_i32 = arith.constant 2 : i32
    %110 = vector.broadcast %c2_i32 : i32 to vector<1x128xi32>
    %111 = arith.cmpi eq, %11, %110 : vector<1x128xi32>
    %112 = vector.shape_cast %99 : vector<1x1xf32> to vector<1x1xf32>
    %113 = vector.broadcast %112 : vector<1x1xf32> to vector<1x128xf32>
    %114 = arith.select %111, %113, %60 : vector<1x128xi1>, vector<1x128xf32>
    %c6_i32 = arith.constant 6 : i32
    %115 = vector.broadcast %c6_i32 : i32 to vector<1x128xi32>
    %116 = arith.cmpi eq, %11, %115 : vector<1x128xi32>
    %117 = vector.shape_cast %109 : vector<1x1xf32> to vector<1x1xf32>
    %118 = vector.broadcast %117 : vector<1x1xf32> to vector<1x128xf32>
    %119 = arith.select %116, %118, %114 : vector<1x128xi1>, vector<1x128xf32>
    %120 = arith.mulf %79, %74 : vector<8x24xf32>
    %cst_30 = arith.constant dense<0.000000e+00> : vector<8xf32>
    %121 = vector.multi_reduction <add>, %120, %cst_30 [1] : vector<8x24xf32> to vector<8xf32>
    %122 = vector.shape_cast %121 : vector<8xf32> to vector<8x1xf32>
    %123 = arith.divf %122, %81 : vector<8x1xf32>
    %124 = arith.subf %83, %123 : vector<8x1xf32>
    %cst_31 = arith.constant 0.000000e+00 : f32
    %125 = vector.broadcast %cst_31 : f32 to vector<8x1xf32>
    %126 = arith.select %10, %124, %125 : vector<8x1xi1>, vector<8x1xf32>
    %127 = vector.shape_cast %126 : vector<8x1xf32> to vector<1x8x1xf32>
    %cst_32 = arith.constant dense<0.000000e+00> : vector<1xf32>
    %128 = vector.multi_reduction <add>, %127, %cst_32 [1, 2] : vector<1x8x1xf32> to vector<1xf32>
    %129 = vector.shape_cast %128 : vector<1xf32> to vector<1x1x1xf32>
    %130 = vector.extract %129[0, 0, 0] : f32 from vector<1x1x1xf32>
    %131 = vector.broadcast %130 : f32 to vector<1x1xf32>
    %132 = arith.addf %73, %131 : vector<1x1xf32>
    %c0_33 = arith.constant 0 : index
    %c0_34 = arith.constant 0 : index
    %133 = vector.load %arg4[%c0_33, %c0_34] : memref<8x40xf32, #tpu.memory_space<vmem>>, vector<8x40xf32>
    %cst_35 = arith.constant dense<0xFF800000> : vector<8xf32>
    %134 = vector.multi_reduction <maximumf>, %133, %cst_35 [1] : vector<8x40xf32> to vector<8xf32>
    %135 = vector.shape_cast %134 : vector<8xf32> to vector<8x1xf32>
    %136 = vector.broadcast %135 : vector<8x1xf32> to vector<8x40xf32>
    %137 = arith.subf %133, %136 : vector<8x40xf32>
    %138 = math.exp %137 : vector<8x40xf32>
    %cst_36 = arith.constant dense<0.000000e+00> : vector<8xf32>
    %139 = vector.multi_reduction <add>, %138, %cst_36 [1] : vector<8x40xf32> to vector<8xf32>
    %140 = vector.shape_cast %139 : vector<8xf32> to vector<8x1xf32>
    %141 = math.log %140 : vector<8x1xf32>
    %142 = arith.addf %141, %135 : vector<8x1xf32>
    %143 = vector.extract_strided_slice %14 {offsets = [0, 2], sizes = [8, 1], strides = [1, 1]} : vector<8x4xi32> to vector<8x1xi32>
    %144 = tpu.iota {dimensions = array<i32: 1>} : vector<8x40xi32>
    %145 = vector.broadcast %143 : vector<8x1xi32> to vector<8x40xi32>
    %146 = arith.cmpi eq, %144, %145 : vector<8x40xi32>
    %cst_37 = arith.constant 0.000000e+00 : f32
    %147 = vector.broadcast %cst_37 : f32 to vector<8x40xf32>
    %148 = arith.select %146, %133, %147 : vector<8x40xi1>, vector<8x40xf32>
    %cst_38 = arith.constant dense<0.000000e+00> : vector<8xf32>
    %149 = vector.multi_reduction <add>, %148, %cst_38 [1] : vector<8x40xf32> to vector<8xf32>
    %150 = vector.shape_cast %149 : vector<8xf32> to vector<8x1xf32>
    %151 = arith.subf %142, %150 : vector<8x1xf32>
    %cst_39 = arith.constant 0.000000e+00 : f32
    %152 = vector.broadcast %cst_39 : f32 to vector<8x1xf32>
    %153 = arith.select %10, %151, %152 : vector<8x1xi1>, vector<8x1xf32>
    %154 = vector.shape_cast %153 : vector<8x1xf32> to vector<1x8x1xf32>
    %cst_40 = arith.constant dense<0.000000e+00> : vector<1xf32>
    %155 = vector.multi_reduction <add>, %154, %cst_40 [1, 2] : vector<1x8x1xf32> to vector<1xf32>
    %156 = vector.shape_cast %155 : vector<1xf32> to vector<1x1x1xf32>
    %157 = vector.extract %156[0, 0, 0] : f32 from vector<1x1x1xf32>
    %158 = vector.broadcast %157 : f32 to vector<1x1xf32>
    %159 = arith.cmpf oge, %150, %135 : vector<8x1xf32>
    %160 = arith.andi %10, %159 : vector<8x1xi1>
    %cst_41 = arith.constant 1.000000e+00 : f32
    %cst_42 = arith.constant 0.000000e+00 : f32
    %161 = vector.broadcast %cst_41 : f32 to vector<8x1xf32>
    %162 = vector.broadcast %cst_42 : f32 to vector<8x1xf32>
    %163 = arith.select %160, %161, %162 : vector<8x1xi1>, vector<8x1xf32>
    %164 = vector.shape_cast %163 : vector<8x1xf32> to vector<1x8x1xf32>
    %cst_43 = arith.constant dense<0.000000e+00> : vector<1xf32>
    %165 = vector.multi_reduction <add>, %164, %cst_43 [1, 2] : vector<1x8x1xf32> to vector<1xf32>
    %166 = vector.shape_cast %165 : vector<1xf32> to vector<1x1x1xf32>
    %167 = vector.extract %166[0, 0, 0] : f32 from vector<1x1x1xf32>
    %168 = vector.broadcast %167 : f32 to vector<1x1xf32>
    %c3_i32 = arith.constant 3 : i32
    %169 = vector.broadcast %c3_i32 : i32 to vector<1x128xi32>
    %170 = arith.cmpi eq, %11, %169 : vector<1x128xi32>
    %171 = vector.shape_cast %158 : vector<1x1xf32> to vector<1x1xf32>
    %172 = vector.broadcast %171 : vector<1x1xf32> to vector<1x128xf32>
    %173 = arith.select %170, %172, %119 : vector<1x128xi1>, vector<1x128xf32>
    %c7_i32 = arith.constant 7 : i32
    %174 = vector.broadcast %c7_i32 : i32 to vector<1x128xi32>
    %175 = arith.cmpi eq, %11, %174 : vector<1x128xi32>
    %176 = vector.shape_cast %168 : vector<1x1xf32> to vector<1x1xf32>
    %177 = vector.broadcast %176 : vector<1x1xf32> to vector<1x128xf32>
    %178 = arith.select %175, %177, %173 : vector<1x128xi1>, vector<1x128xf32>
    %179 = arith.mulf %138, %133 : vector<8x40xf32>
    %cst_44 = arith.constant dense<0.000000e+00> : vector<8xf32>
    %180 = vector.multi_reduction <add>, %179, %cst_44 [1] : vector<8x40xf32> to vector<8xf32>
    %181 = vector.shape_cast %180 : vector<8xf32> to vector<8x1xf32>
    %182 = arith.divf %181, %140 : vector<8x1xf32>
    %183 = arith.subf %142, %182 : vector<8x1xf32>
    %cst_45 = arith.constant 0.000000e+00 : f32
    %184 = vector.broadcast %cst_45 : f32 to vector<8x1xf32>
    %185 = arith.select %10, %183, %184 : vector<8x1xi1>, vector<8x1xf32>
    %186 = vector.shape_cast %185 : vector<8x1xf32> to vector<1x8x1xf32>
    %cst_46 = arith.constant dense<0.000000e+00> : vector<1xf32>
    %187 = vector.multi_reduction <add>, %186, %cst_46 [1, 2] : vector<1x8x1xf32> to vector<1xf32>
    %188 = vector.shape_cast %187 : vector<1xf32> to vector<1x1x1xf32>
    %189 = vector.extract %188[0, 0, 0] : f32 from vector<1x1x1xf32>
    %190 = vector.broadcast %189 : f32 to vector<1x1xf32>
    %191 = arith.addf %132, %190 : vector<1x1xf32>
    %c0_47 = arith.constant 0 : index
    %c0_48 = arith.constant 0 : index
    %192 = vector.load %arg5[%c0_47, %c0_48] : memref<8x100xf32, #tpu.memory_space<vmem>>, vector<8x100xf32>
    %cst_49 = arith.constant dense<0xFF800000> : vector<8xf32>
    %193 = vector.multi_reduction <maximumf>, %192, %cst_49 [1] : vector<8x100xf32> to vector<8xf32>
    %194 = vector.shape_cast %193 : vector<8xf32> to vector<8x1xf32>
    %195 = vector.broadcast %194 : vector<8x1xf32> to vector<8x100xf32>
    %196 = arith.subf %192, %195 : vector<8x100xf32>
    %197 = math.exp %196 : vector<8x100xf32>
    %cst_50 = arith.constant dense<0.000000e+00> : vector<8xf32>
    %198 = vector.multi_reduction <add>, %197, %cst_50 [1] : vector<8x100xf32> to vector<8xf32>
    %199 = vector.shape_cast %198 : vector<8xf32> to vector<8x1xf32>
    %200 = math.log %199 : vector<8x1xf32>
    %201 = arith.addf %200, %194 : vector<8x1xf32>
    %202 = vector.extract_strided_slice %14 {offsets = [0, 3], sizes = [8, 1], strides = [1, 1]} : vector<8x4xi32> to vector<8x1xi32>
    %203 = tpu.iota {dimensions = array<i32: 1>} : vector<8x100xi32>
    %204 = vector.broadcast %202 : vector<8x1xi32> to vector<8x100xi32>
    %205 = arith.cmpi eq, %203, %204 : vector<8x100xi32>
    %cst_51 = arith.constant 0.000000e+00 : f32
    %206 = vector.broadcast %cst_51 : f32 to vector<8x100xf32>
    %207 = arith.select %205, %192, %206 : vector<8x100xi1>, vector<8x100xf32>
    %cst_52 = arith.constant dense<0.000000e+00> : vector<8xf32>
    %208 = vector.multi_reduction <add>, %207, %cst_52 [1] : vector<8x100xf32> to vector<8xf32>
    %209 = vector.shape_cast %208 : vector<8xf32> to vector<8x1xf32>
    %210 = arith.subf %201, %209 : vector<8x1xf32>
    %cst_53 = arith.constant 0.000000e+00 : f32
    %211 = vector.broadcast %cst_53 : f32 to vector<8x1xf32>
    %212 = arith.select %10, %210, %211 : vector<8x1xi1>, vector<8x1xf32>
    %213 = vector.shape_cast %212 : vector<8x1xf32> to vector<1x8x1xf32>
    %cst_54 = arith.constant dense<0.000000e+00> : vector<1xf32>
    %214 = vector.multi_reduction <add>, %213, %cst_54 [1, 2] : vector<1x8x1xf32> to vector<1xf32>
    %215 = vector.shape_cast %214 : vector<1xf32> to vector<1x1x1xf32>
    %216 = vector.extract %215[0, 0, 0] : f32 from vector<1x1x1xf32>
    %217 = vector.broadcast %216 : f32 to vector<1x1xf32>
    %218 = arith.cmpf oge, %209, %194 : vector<8x1xf32>
    %219 = arith.andi %10, %218 : vector<8x1xi1>
    %cst_55 = arith.constant 1.000000e+00 : f32
    %cst_56 = arith.constant 0.000000e+00 : f32
    %220 = vector.broadcast %cst_55 : f32 to vector<8x1xf32>
    %221 = vector.broadcast %cst_56 : f32 to vector<8x1xf32>
    %222 = arith.select %219, %220, %221 : vector<8x1xi1>, vector<8x1xf32>
    %223 = vector.shape_cast %222 : vector<8x1xf32> to vector<1x8x1xf32>
    %cst_57 = arith.constant dense<0.000000e+00> : vector<1xf32>
    %224 = vector.multi_reduction <add>, %223, %cst_57 [1, 2] : vector<1x8x1xf32> to vector<1xf32>
    %225 = vector.shape_cast %224 : vector<1xf32> to vector<1x1x1xf32>
    %226 = vector.extract %225[0, 0, 0] : f32 from vector<1x1x1xf32>
    %227 = vector.broadcast %226 : f32 to vector<1x1xf32>
    %c4_i32 = arith.constant 4 : i32
    %228 = vector.broadcast %c4_i32 : i32 to vector<1x128xi32>
    %229 = arith.cmpi eq, %11, %228 : vector<1x128xi32>
    %230 = vector.shape_cast %217 : vector<1x1xf32> to vector<1x1xf32>
    %231 = vector.broadcast %230 : vector<1x1xf32> to vector<1x128xf32>
    %232 = arith.select %229, %231, %178 : vector<1x128xi1>, vector<1x128xf32>
    %c8_i32_58 = arith.constant 8 : i32
    %233 = vector.broadcast %c8_i32_58 : i32 to vector<1x128xi32>
    %234 = arith.cmpi eq, %11, %233 : vector<1x128xi32>
    %235 = vector.shape_cast %227 : vector<1x1xf32> to vector<1x1xf32>
    %236 = vector.broadcast %235 : vector<1x1xf32> to vector<1x128xf32>
    %237 = arith.select %234, %236, %232 : vector<1x128xi1>, vector<1x128xf32>
    %c9_i32 = arith.constant 9 : i32
    %238 = vector.broadcast %c9_i32 : i32 to vector<1x128xi32>
    %239 = arith.cmpi eq, %11, %238 : vector<1x128xi32>
    %240 = vector.shape_cast %191 : vector<1x1xf32> to vector<1x1xf32>
    %241 = vector.broadcast %240 : vector<1x1xf32> to vector<1x128xf32>
    %242 = arith.select %239, %241, %237 : vector<1x128xi1>, vector<1x128xf32>
    %243 = tpu.iota {dimensions = array<i32: 0>} : vector<8x128xi32>
    %c0_59 = arith.constant 0 : index
    %c0_60 = arith.constant 0 : index
    %244 = vector.load %arg7[%c0_59, %c0_60] : memref<8x128xf32, #tpu.memory_space<vmem>>, vector<8x128xf32>
    %c0_i32_61 = arith.constant 0 : i32
    %245 = vector.broadcast %c0_i32_61 : i32 to vector<8x128xi32>
    %246 = arith.cmpi eq, %243, %245 : vector<8x128xi32>
    %cst_62 = arith.constant 0.000000e+00 : f32
    %247 = vector.shape_cast %242 : vector<1x128xf32> to vector<1x128xf32>
    %248 = vector.broadcast %247 : vector<1x128xf32> to vector<8x128xf32>
    %249 = vector.broadcast %cst_62 : f32 to vector<8x128xf32>
    %250 = arith.select %246, %248, %249 : vector<8x128xi1>, vector<8x128xf32>
    %251 = arith.addf %244, %250 : vector<8x128xf32>
    %c0_63 = arith.constant 0 : index
    %c0_64 = arith.constant 0 : index
    %252 = vector.load %arg7[%c0_63, %c0_64] : memref<8x128xf32, #tpu.memory_space<vmem>>, vector<8x128xf32>
    tpu.vector_store %arg7[%c0_63, %c0_64], %251 {strides = array<i32>} : memref<8x128xf32, #tpu.memory_space<vmem>>, vector<8x128xf32>,
    return
  }
  func.func @transform_0(%arg0: i32, %arg1: i32) -> (i32, i32) {
    %c1_i32 = arith.constant 1 : i32
    %0 = arith.muli %arg0, %c1_i32 : i32
    %1 = arith.addi %0, %arg1 : i32
    %c0_i32 = arith.constant 0 : i32
    %c0_i32_0 = arith.constant 0 : i32
    return %1, %c0_i32 : i32, i32
  }
  func.func @transform_1(%arg0: i32, %arg1: i32) -> (i32, i32) {
    %c1_i32 = arith.constant 1 : i32
    %0 = arith.muli %arg0, %c1_i32 : i32
    %1 = arith.addi %0, %arg1 : i32
    %c0_i32 = arith.constant 0 : i32
    %c0_i32_0 = arith.constant 0 : i32
    return %1, %c0_i32 : i32, i32
  }
  func.func @transform_2(%arg0: i32, %arg1: i32) -> (i32, i32) {
    %c1_i32 = arith.constant 1 : i32
    %0 = arith.muli %arg0, %c1_i32 : i32
    %1 = arith.addi %0, %arg1 : i32
    %c0_i32 = arith.constant 0 : i32
    %c0_i32_0 = arith.constant 0 : i32
    return %1, %c0_i32 : i32, i32
  }
  func.func @transform_3(%arg0: i32, %arg1: i32) -> (i32, i32) {
    %c1_i32 = arith.constant 1 : i32
    %0 = arith.muli %arg0, %c1_i32 : i32
    %1 = arith.addi %0, %arg1 : i32
    %c0_i32 = arith.constant 0 : i32
    %c0_i32_0 = arith.constant 0 : i32
    return %1, %c0_i32 : i32, i32
  }
  func.func @transform_4(%arg0: i32, %arg1: i32) -> (i32, i32) {
    %c1_i32 = arith.constant 1 : i32
    %0 = arith.muli %arg0, %c1_i32 : i32
    %1 = arith.addi %0, %arg1 : i32
    %c0_i32 = arith.constant 0 : i32
    %c0_i32_0 = arith.constant 0 : i32
    return %1, %c0_i32 : i32, i32
  }
  func.func @transform_5(%arg0: i32, %arg1: i32) -> (i32, i32) {
    %c0_i32 = arith.constant 0 : i32
    %c0_i32_0 = arith.constant 0 : i32
    return %arg0, %c0_i32 : i32, i32
  }
}

</mosaic_0001>

<bundles_post_ra>
// kernel: tpu_custom_call.1
= control target key start
LH: loop header
LB: loop body
LE: loop exit
PB: predicated region body
PF: predicated region fallthrough
CT: control target
= control target key end

     0   :  { %10 = vsyncpa [#allocation3], 0  ;;  %s809_s0 = inlined_call_operand.vmem [shape: f32[8,10], index: 0, kind: input, shape index: {}]   ;;  %s810_s1 = inlined_call_operand.hbm [shape: f32[8,24], index: 1, kind: input, shape index: {}]   ;;  %s811_s2 = inlined_call_operand.hbm [shape: f32[8,40], index: 2, kind: input, shape index: {}]   ;;  %s812_s3 = inlined_call_operand.hbm [shape: f32[8,100], index: 3, kind: input, shape index: {}]   ;;  %s813_s4 = inlined_call_operand.vmem [shape: s32[8,4], index: 4, kind: input, shape index: {}]   ;;  %s814_s5 = inlined_call_operand.hbm [shape: f32[8,128], index: 5, kind: output, shape index: {}]  }
   0x1   :  { %11 = vsyncpa [#allocation6], 0  ;;  %s43_s20 = sshll.u32 %s811_s2, 4  ;;  %s44_s20 = int_to_ptr.hbm [resolvable:$true] %s43_s20 }
   0x2   :  { %12 = vsyncpa [#allocation4], 0  ;;  %s632_s21 = smov [#allocation5]   ;;  %s29_s25 = sshll.u32 %s810_s1, 4  ;;  %s30_s25 = int_to_ptr.hbm [resolvable:$true] %s29_s25 }
   0x3   :  { %s45_s22 = sshll.u32 %s632_s21, 4  ;;  %s633_s26 = smov [#allocation2]   ;;  %s46_s22 = int_to_ptr.vmem [resolvable:$true] %s45_s22 }
   0x4   :  { %48 = dma.hbm_to_vmem [thread:$0]  %s44_s20, 128, %s46_s22, [#allocation6]  }
   0x5   :  { %s31_s27 = sshll.u32 %s633_s26, 4  ;;  %s57_s30 = sshll.u32 %s812_s3, 4  ;;  %s32_s27 = int_to_ptr.vmem [resolvable:$true] %s31_s27  ;;  %s58_s30 = int_to_ptr.hbm [resolvable:$true] %s57_s30 }
   0x6   :  { %34 = dma.hbm_to_vmem [thread:$0]  %s30_s25, 128, %s32_s27, [#allocation3]  }
   0x7   :  { %s634_s2 = smov [#allocation7]  }
   0x8   :  { %s59_s6 = sshll.u32 %s634_s2, 4  ;;  %s60_s6 = int_to_ptr.vmem [resolvable:$true] %s59_s6 }
   0x9   :  { %62 = dma.hbm_to_vmem [thread:$0]  %s58_s30, 128, %s60_s6, [#allocation6]  }
   0xa   :  { %626 = dma.done.wait [#allocation3], 128  }
   0xb   :  { %627 = vsyncadd [#allocation3], 4294967168 }
   0xc   :  { %628 = dma.done.wait [#allocation6], 256  }
   0xd   :  { %629 = vsyncadd [#allocation6], 4294967040  ;;  %v635_v0 = vmov 2   ;;  %vm297_vm0 = vcmask 326656   ;;  %vm124_vm1 = vcmask 80896   ;;  %v636_v1 = vmov 0  }
   0xe   :  { %505 = vset.pattern.permute.xlu0 %v635_v0  ;;  %503 = vset.pattern.permute.xlu2 %v636_v1  ;;  %v637_v2 = vmov 3   ;;  %v680_v3 = vld [vmem:[#allocation5] sm:$0xff]  ;;  %v685_v4 = vld [vmem:[%s809_s0] sm:$0xff]  ;;  %vm211_vm2 = vcmask 195584   ;;  %v694_v9 = vld [vmem:[#allocation7] sm:$0xff]  ;;  %vm383_vm3 = vcmask 818176   ;;  %v115_v19 = vlaneseq }
   0xf   :  { %506 = vset.pattern.permute.xlu1 %v637_v2  ;;  %v298_v5 = vsel %vm297_vm0, %v680_v3, -inf  ;;  %v125_v6 = vsel %vm124_vm1, %v685_v4, -inf  ;;  %v122_v7 = vld [vmem:[%s813_s4] sm:$0xff]  ;;  %v384_v11 = vsel %vm383_vm3, %v694_v9, -inf  ;;  %v638_v12 = vmov 1   ;;  %s640_s18 = smov [#allocation8]  }
  0x10   :  { %299 = vmax.xlane.f32.xlu1 %v298_v5  ;;  %126 = vmax.xlane.f32.xlu0 %v125_v6  ;;  %v210_v8 = vld [vmem:[#allocation2] sm:$0xff]  ;;  %v711_v23 = vand.u32 127, %v115_v19  ;;  %vm147_vm8 = vcmask 7168   ;;  %v639_v59 = vmov 0.0   ;;  %s447_s19 = sshll.u32 %s640_s18, 4  ;;  %s449_s22 = sshll.u32 %s814_s5, 4  ;;  %s448_s19 = int_to_ptr.vmem [resolvable:$true] %s447_s19  ;;  %s450_s22 = int_to_ptr.hbm [resolvable:$true] %s449_s22 }
  0x11   :  { %138 = vperm.xlu2 %503, %v122_v7   ;;  %v212_v10 = vsel %vm211_vm2, %v210_v8, -inf }
  0x18   :  { %213 = vmax.xlane.f32.xlu0 %v212_v10  ;;  %385 = vmax.xlane.f32.xlu1 %v384_v11 }
  0x19   :  { %504 = vset.pattern.permute.xlu2 %v638_v12 }
  0x1a   :  { %225 = vperm.xlu2 %504, %v122_v7  }
  0x2c   :  { %311 = vperm.xlu0 %505, %v122_v7  }
  0x31   :  { %397 = vperm.xlu1 %506, %v122_v7  }
  0x34   :  { %507 = vset.pattern.permute.xlu0 %v637_v2 }
  0x6b   :  { %v139_v21 = vpop.permute.xlu2 %138 }
  0x6c   :  { %vm140_vm4 = vcmp.eq.s32.totalorder %v711_v23, %v139_v21 }
  0x6d   :  { %v141_v29 = vsel %vm140_vm4, %v685_v4, 0.0 }
  0x6e   :  { %v142_v32 = vsel %vm124_vm1, %v141_v29, 0.0 }
  0x74   :  { %v226_v30 = vpop.permute.xlu2 %225 }
  0x75   :  { %vm227_vm5 = vcmp.eq.s32.totalorder %v711_v23, %v226_v30 }
  0x76   :  { %v228_v36 = vsel %vm227_vm5, %v210_v8, 0.0 }
  0x77   :  { %v229_v39 = vsel %vm211_vm2, %v228_v36, 0.0 }
  0x83   :  { %v699_v13 = vpop.xlane.xlu1 %299  ;;  %v701_v14 = vpop.xlane.xlu0 %126 }
  0x84   :  { %v301_v15 = vsub.f32 %v680_v3, %v699_v13  ;;  %v128_v16 = vsub.f32 %v685_v4, %v701_v14 }
  0x86   :  { %v302_v17 = vmul.f32 1.442695, %v301_v15  ;;  %v129_v18 = vmul.f32 1.442695, %v128_v16 }
  0x88   :  { %508 = vpow2.f32 %v302_v17 }
  0x89   :  { %510 = vpow2.f32 %v129_v18 }
  0x8b   :  { %v707_v20 = vpop.xlane.xlu0 %213  ;;  %v720_v35 = vpop.xlane.xlu1 %385 }
  0x8c   :  { %v215_v22 = vsub.f32 %v210_v8, %v707_v20  ;;  %v387_v38 = vsub.f32 %v694_v9, %v720_v35 }
  0x8e   :  { %v509_v24 = vpop.eup %508  ;;  %v216_v25 = vmul.f32 1.442695, %v215_v22  ;;  %v388_v41 = vmul.f32 1.442695, %v387_v38 }
  0x8f   :  { %v511_v26 = vpop.eup %510  ;;  %v304_v27 = vsel %vm297_vm0, %v509_v24, 0.0  ;;  %v349_v42 = vmul.f32 %v509_v24, %v680_v3 }
  0x90   :  { %512 = vpow2.f32 %v216_v25  ;;  %305 = vadd.xlane.f32.xlu0 %v304_v27  ;;  %v131_v28 = vsel %vm124_vm1, %v511_v26, 0.0  ;;  %v177_v48 = vmul.f32 %v511_v26, %v685_v4 }
  0x91   :  { %132 = vadd.xlane.f32.xlu2 %v131_v28  ;;  %514 = vpow2.f32 %v388_v41  ;;  %v350_v44 = vsel %vm297_vm0, %v349_v42, 0.0 }
  0x92   :  { %v178_v50 = vsel %vm124_vm1, %v177_v48, 0.0 }
  0x96   :  { %v513_v31 = vpop.eup %512 }
  0x97   :  { %v218_v33 = vsel %vm211_vm2, %v513_v31, 0.0  ;;  %v263_v34 = vmul.f32 %v513_v31, %v210_v8  ;;  %v515_v46 = vpop.eup %514 }
  0x98   :  { %219 = vadd.xlane.f32.xlu1 %v218_v33  ;;  %v390_v47 = vsel %vm383_vm3, %v515_v46, 0.0 }
  0x99   :  { %143 = vadd.xlane.f32.xlu2 %v142_v32  ;;  %v264_v37 = vsel %vm211_vm2, %v263_v34, 0.0 }
  0x9e   :  { %v312_v40 = vpop.permute.xlu0 %311 }
  0x9f   :  { %vm313_vm6 = vcmp.eq.s32.totalorder %v711_v23, %v312_v40 }
  0xa0   :  { %265 = vadd.xlane.f32.xlu1 %v264_v37  ;;  %v314_v43 = vsel %vm313_vm6, %v680_v3, 0.0 }
  0xa1   :  { %230 = vadd.xlane.f32.xlu2 %v229_v39  ;;  %v315_v45 = vsel %vm297_vm0, %v314_v43, 0.0 }
  0xa3   :  { %v398_v49 = vpop.permute.xlu1 %397 }
  0xa4   :  { %vm399_vm7 = vcmp.eq.s32.totalorder %v711_v23, %v398_v49 }
  0xa5   :  { %v400_v51 = vsel %vm399_vm7, %v694_v9, 0.0 }
  0xa6   :  { %v401_v52 = vsel %vm383_vm3, %v400_v51, 0.0 }
  0xa8   :  { %351 = vadd.xlane.f32.xlu1 %v350_v44 }
  0xa9   :  { %316 = vadd.xlane.f32.xlu2 %v315_v45 }
  0xb1   :  { %391 = vadd.xlane.f32.xlu2 %v390_v47 }
  0xb9   :  { %179 = vadd.xlane.f32.xlu2 %v178_v50 }
  0xc1   :  { %402 = vadd.xlane.f32.xlu2 %v401_v52 }
 0x103   :  { %v742_v57 = vpop.xlane.xlu0 %305 }
 0x104   :  { %v737_v53 = vpop.xlane.xlu2 %132  ;;  %vm358_vm4 = vweird.f32 %v742_v57  ;;  %v364_v49 = vand.u32 2147483648, %v742_v57  ;;  %v362_v51 = vand.u32 2147483647, %v742_v57 }
 0x105   :  { %516 = vlog2.f32 %v737_v53  ;;  %vm186_vm13 = vweird.f32 %v737_v53  ;;  %v192_v32 = vand.u32 2147483648, %v737_v53 }
 0x106   :  { %vm363_vm7 = vcmp.eq.f32.partialorder %v362_v51, 8.507059e+37 }
 0x107   :  { %v193_v39 = vor.u32 1.1754944e-38, %v192_v32 }
 0x10b   :  { %v740_v54 = vpop.xlane.xlu1 %219  ;;  %v517_v55 = vpop.eup %516 }
 0x10c   :  { %v144_v56 = vpop.xlane.xlu2 %143  ;;  %v135_v58 = vmul.f32 0.6931472, %v517_v55  ;;  %518 = vlog2.f32 %v740_v54  ;;  %vm272_vm14 = vweird.f32 %v740_v54  ;;  %v278_v36 = vand.u32 2147483648, %v740_v54 }
 0x10d   :  { %vm158_vm9 = vcmp.ge.f32.partialorder %v144_v56, %v701_v14  ;;  %520 = vrcp.f32 %v737_v53  ;;  %v276_v37 = vand.u32 2147483647, %v740_v54 }
 0x10e   :  { %v160_v60 = vsel %vm158_vm9, 1.0, %v639_v59  ;;  %v749_v61 = vadd.f32 %v135_v58, %v701_v14  ;;  %522 = vlog2.f32 %v742_v57  ;;  %v279_v43 = vor.u32 1.1754944e-38, %v278_v36 }
 0x10f   :  { %v161_v62 = vsel %vm147_vm8, %v160_v60, 0.0  ;;  %524 = vrcp.f32 %v740_v54  ;;  %vm277_vm3 = vcmp.eq.f32.partialorder %v276_v37, 8.507059e+37 }
 0x110   :  { %162 = vadd.xlane.f32.xlu1 %v161_v62  ;;  %v145_v63 = vsub.f32 %v749_v61, %v144_v56  ;;  %526 = vrcp.f32 %v742_v57  ;;  %v365_v56 = vor.u32 1.1754944e-38, %v364_v49 }
 0x112   :  { %v519_v0 = vpop.eup %518  ;;  %v148_v1 = vsel %vm147_vm8, %v145_v63, 0.0 }
 0x113   :  { %149 = vadd.xlane.f32.xlu0 %v148_v1  ;;  %v222_v2 = vmul.f32 0.6931472, %v519_v0  ;;  %v521_v4 = vpop.eup %520  ;;  %v266_v44 = vpop.xlane.xlu1 %265 }
 0x114   :  { %v231_v3 = vpop.xlane.xlu2 %230  ;;  %v523_v5 = vpop.eup %522  ;;  %v182_v11 = vmul.f32 %v521_v4, %v737_v53  ;;  %vm187_vm12 = vweird.f32 %v521_v4 }
 0x115   :  { %vm244_vm10 = vcmp.ge.f32.partialorder %v231_v3, %v707_v20  ;;  %v758_v6 = vadd.f32 %v222_v2, %v707_v20  ;;  %v525_v9 = vpop.eup %524  ;;  %v308_v12 = vmul.f32 0.6931472, %v523_v5  ;;  %vm188_vm0 = vmor %vm186_vm13, %vm187_vm12  ;;  %vm260_vm12 = vcmp.eq.s32.totalorder %v711_v23, 6 }
 0x116   :  { %v246_v7 = vsel %vm244_vm10, 1.0, %v639_v59  ;;  %v268_v15 = vmul.f32 %v525_v9, %v740_v54  ;;  %v183_v18 = vsub.f32 1.0, %v182_v11  ;;  %v527_v25 = vpop.eup %526  ;;  %vm273_vm15 = vweird.f32 %v525_v9 }
 0x117   :  { %v247_v8 = vsel %vm147_vm8, %v246_v7, 0.0  ;;  %v232_v10 = vsub.f32 %v758_v6, %v231_v3  ;;  %v768_v17 = vadd.f32 %v308_v12, %v699_v13  ;;  %v354_v27 = vmul.f32 %v527_v25, %v742_v57  ;;  %vm274_vm1 = vmor %vm272_vm14, %vm273_vm15 }
 0x118   :  { %248 = vadd.xlane.f32.xlu1 %v247_v8  ;;  %v269_v21 = vsub.f32 1.0, %v268_v15  ;;  %v184_v26 = vmul.f32 %v521_v4, %v183_v18  ;;  %vm359_vm5 = vweird.f32 %v527_v25  ;;  %vm174_vm10 = vcmp.eq.s32.totalorder %v711_v23, 5 }
 0x119   :  { %v234_v14 = vsel %vm147_vm8, %v232_v10, 0.0  ;;  %v355_v34 = vsub.f32 1.0, %v354_v27  ;;  %vm360_vm6 = vmor %vm358_vm4, %vm359_vm5  ;;  %vm343_vm13 = vcmp.eq.s32.totalorder %v711_v23, 3  ;;  %vm346_vm14 = vcmp.eq.s32.totalorder %v711_v23, 7 }
 0x11a   :  { %v270_v28 = vmul.f32 %v525_v9, %v269_v21  ;;  %v185_v31 = vadd.f32 %v521_v4, %v184_v26  ;;  %vm429_vm15 = vcmp.eq.s32.totalorder %v711_v23, 4 }
 0x11b   :  { %235 = vadd.xlane.f32.xlu0 %v234_v14  ;;  %v356_v41 = vmul.f32 %v527_v25, %v355_v34  ;;  %v352_v57 = vpop.xlane.xlu1 %351 }
 0x11c   :  { %v317_v16 = vpop.xlane.xlu2 %316  ;;  %v271_v33 = vadd.f32 %v525_v9, %v270_v28  ;;  %v189_v38 = vsel %vm188_vm0, %v521_v4, %v185_v31  ;;  %vm432_vm0 = vcmp.eq.s32.totalorder %v711_v23, 8 }
 0x11d   :  { %vm330_vm11 = vcmp.ge.f32.partialorder %v317_v16, %v699_v13  ;;  %v318_v22 = vsub.f32 %v768_v17, %v317_v16  ;;  %v190_v13 = vand.u32 2147483647, %v737_v53  ;;  %v357_v50 = vadd.f32 %v527_v25, %v356_v41 }
 0x11e   :  { %v332_v20 = vsel %vm330_vm11, 1.0, %v639_v59  ;;  %v275_v40 = vsel %vm274_vm1, %v525_v9, %v271_v33  ;;  %vm257_vm11 = vcmp.eq.s32.totalorder %v711_v23, 2  ;;  %vm435_vm1 = vcmp.eq.s32.totalorder %v711_v23, 9 }
 0x11f   :  { %v333_v24 = vsel %vm147_vm8, %v332_v20, 0.0  ;;  %v320_v29 = vsel %vm147_vm8, %v318_v22, 0.0  ;;  %vm191_vm2 = vcmp.eq.f32.partialorder %v190_v13, 8.507059e+37  ;;  %v280_v48 = vsel %vm277_vm3, %v279_v43, %v275_v40 }
 0x120   :  { %334 = vadd.xlane.f32.xlu1 %v333_v24  ;;  %v194_v45 = vsel %vm191_vm2, %v193_v39, %v189_v38  ;;  %v281_v54 = vmul.f32 %v280_v48, %v266_v44  ;;  %v361_v58 = vsel %vm360_vm6, %v527_v25, %v357_v50 }
 0x121   :  { %v366_v1 = vsel %vm363_vm7, %v365_v56, %v361_v58 }
 0x122   :  { %v282_v0 = vsub.f32 %v758_v6, %v281_v54  ;;  %v367_v4 = vmul.f32 %v366_v1, %v352_v57 }
 0x123   :  { %321 = vadd.xlane.f32.xlu0 %v320_v29 }
 0x124   :  { %v392_v30 = vpop.xlane.xlu2 %391  ;;  %v284_v5 = vsel %vm147_vm8, %v282_v0, 0.0  ;;  %v368_v7 = vsub.f32 %v768_v17, %v367_v4 }
 0x125   :  { %528 = vlog2.f32 %v392_v30 }
 0x12b   :  { %v529_v42 = vpop.eup %528 }
 0x12c   :  { %v180_v46 = vpop.xlane.xlu2 %179  ;;  %v394_v52 = vmul.f32 0.6931472, %v529_v42 }
 0x12d   :  { %v195_v47 = vmul.f32 %v194_v45, %v180_v46 }
 0x12e   :  { %v395_v60 = vadd.f32 %v394_v52, %v720_v35 }
 0x12f   :  { %v196_v53 = vsub.f32 %v749_v61, %v195_v47 }
 0x131   :  { %v198_v55 = vsel %vm147_vm8, %v196_v53, 0.0 }
 0x132   :  { %199 = vadd.xlane.f32.xlu2 %v198_v55 }
 0x134   :  { %v403_v62 = vpop.xlane.xlu2 %402 }
 0x135   :  { %v404_v63 = vsub.f32 %v395_v60, %v403_v62  ;;  %vm416_vm9 = vcmp.ge.f32.partialorder %v403_v62, %v720_v35  ;;  %v370_v35 = vsel %vm147_vm8, %v368_v7, 0.0 }
 0x136   :  { %v418_v61 = vsel %vm416_vm9, 1.0, %v639_v59 }
 0x137   :  { %v419_v2 = vsel %vm147_vm8, %v418_v61, 0.0  ;;  %v406_v3 = vsel %vm147_vm8, %v404_v63, 0.0  ;;  %vm171_vm8 = vcmp.eq.s32.totalorder %v711_v23, 1 }
 0x138   :  { %420 = vadd.xlane.f32.xlu1 %v419_v2  ;;  %407 = vadd.xlane.f32.xlu0 %v406_v3 }
 0x13a   :  { %285 = vadd.xlane.f32.xlu2 %v284_v5 }
 0x142   :  { %371 = vadd.xlane.f32.xlu2 %v370_v35 }
 0x183   :  { %v163_v6 = vpop.xlane.xlu1 %162 }
 0x184   :  { %v164_v8 = vrot.slane %v163_v6, 4 }
 0x186   :  { %v165_v9 = vadd.f32 %v164_v8, %v163_v6  ;;  %v150_v10 = vpop.xlane.xlu0 %149 }
 0x187   :  { %v151_v11 = vrot.slane %v150_v10, 4 }
 0x188   :  { %v166_v59 = vrot.slane %v165_v9, 2 }
 0x189   :  { %v152_v12 = vadd.f32 %v151_v11, %v150_v10 }
 0x18a   :  { %v167_v14 = vadd.f32 %v166_v59, %v165_v9 }
 0x18b   :  { %v153_v15 = vrot.slane %v152_v12, 2  ;;  %v249_v24 = vpop.xlane.xlu1 %248 }
 0x18c   :  { %v168_v18 = vrot.slane %v167_v14, 1  ;;  %v250_v25 = vrot.slane %v249_v24, 4 }
 0x18d   :  { %v154_v16 = vadd.f32 %v153_v15, %v152_v12 }
 0x18e   :  { %v169_v22 = vadd.f32 %v168_v18, %v167_v14  ;;  %v236_v17 = vpop.xlane.xlu0 %235  ;;  %v251_v27 = vadd.f32 %v250_v25, %v249_v24 }
 0x18f   :  { %v155_v20 = vrot.slane %v154_v16, 1  ;;  %v237_v26 = vrot.slane %v236_v17, 4 }
 0x190   :  { %v252_v31 = vrot.slane %v251_v27, 2 }
 0x191   :  { %v156_v21 = vadd.f32 %v155_v20, %v154_v16  ;;  %v238_v28 = vadd.f32 %v237_v26, %v236_v17 }
 0x192   :  { %v253_v40 = vadd.f32 %v252_v31, %v251_v27 }
 0x193   :  { %472 = vpush %v156_v21  ;;  %v335_v30 = vpop.xlane.xlu1 %334  ;;  %v239_v13 = vrot.slane %v238_v28, 2 }
 0x194   :  { %474 = vpush %v169_v22  ;;  %v336_v34 = vrot.slane %v335_v30, 4  ;;  %v254_v50 = vrot.slane %v253_v40, 1 }
 0x195   :  { %v240_v39 = vadd.f32 %v239_v13, %v238_v28 }
 0x196   :  { %v322_v29 = vpop.xlane.xlu0 %321  ;;  %v337_v41 = vadd.f32 %v336_v34, %v335_v30  ;;  %v255_v57 = vadd.f32 %v254_v50, %v253_v40 }
 0x197   :  { %v323_v32 = vrot.slane %v322_v29, 4  ;;  %v241_v49 = vrot.slane %v240_v39, 1 }
 0x198   :  { %v338_v51 = vrot.slane %v337_v41, 2 }
 0x199   :  { %v324_v38 = vadd.f32 %v323_v32, %v322_v29  ;;  %v242_v60 = vadd.f32 %v241_v49, %v240_v39 }
 0x19a   :  { %v339_v1 = vadd.f32 %v338_v51, %v337_v41 }
 0x19b   :  { %v325_v46 = vrot.slane %v324_v38, 2 }
 0x19c   :  { %v340_v6 = vrot.slane %v339_v1, 1 }
 0x19d   :  { %v326_v62 = vadd.f32 %v325_v46, %v324_v38 }
 0x19e   :  { %v341_v14 = vadd.f32 %v340_v6, %v339_v1 }
 0x19f   :  { %v327_v4 = vrot.slane %v326_v62, 1 }
 0x1a1   :  { %v328_v59 = vadd.f32 %v327_v4, %v326_v62 }
 0x1a5   :  { %v200_v33 = vpop.xlane.xlu2 %199 }
 0x1a6   :  { %v201_v36 = vrot.slane %v200_v33, 4 }
 0x1a8   :  { %v202_v37 = vadd.f32 %v201_v36, %v200_v33 }
 0x1aa   :  { %v203_v42 = vrot.slane %v202_v37, 2 }
 0x1ab   :  { %v421_v43 = vpop.xlane.xlu1 %420  ;;  %v408_v44 = vpop.xlane.xlu0 %407 }
 0x1ac   :  { %v204_v45 = vadd.f32 %v203_v42, %v202_v37  ;;  %v409_v47 = vrot.slane %v408_v44, 4  ;;  %v422_v52 = vrot.slane %v421_v43, 4  ;;  %v116_v37 = vshrl.u32 %v115_v19, 7 }
 0x1ad   :  { %v286_v48 = vpop.xlane.xlu2 %285 }
 0x1ae   :  { %v287_v53 = vrot.slane %v286_v48, 4  ;;  %v205_v54 = vrot.slane %v204_v45, 1  ;;  %v410_v58 = vadd.f32 %v409_v47, %v408_v44  ;;  %v423_v63 = vadd.f32 %v422_v52, %v421_v43 }
 0x1af   :  { %vm438_vm2 = vcmp.eq.s32.totalorder %v116_v37, 0 }
 0x1b0   :  { %v288_v55 = vadd.f32 %v287_v53, %v286_v48  ;;  %v206_v56 = vadd.f32 %v205_v54, %v204_v45  ;;  %v411_v2 = vrot.slane %v410_v58, 2  ;;  %v424_v5 = vrot.slane %v423_v63, 2 }
 0x1b2   :  { %v289_v0 = vrot.slane %v288_v55, 2  ;;  %476 = vpush %v206_v56  ;;  %v412_v10 = vadd.f32 %v411_v2, %v410_v58  ;;  %v425_v11 = vadd.f32 %v424_v5, %v423_v63 }
 0x1b3   :  { %478 = vpush %v242_v60 }
 0x1b4   :  { %480 = vpush %v255_v57  ;;  %v290_v61 = vadd.f32 %v289_v0, %v288_v55  ;;  %v413_v16 = vrot.slane %v412_v10, 1  ;;  %v426_v20 = vrot.slane %v425_v11, 1 }
 0x1b5   :  { %v372_v3 = vpop.xlane.xlu2 %371 }
 0x1b6   :  { %v373_v7 = vrot.slane %v372_v3, 4  ;;  %v291_v35 = vrot.slane %v290_v61, 1  ;;  %v414_v22 = vadd.f32 %v413_v16, %v412_v10  ;;  %v427_v17 = vadd.f32 %v426_v20, %v425_v11 }
 0x1b8   :  { %v374_v8 = vadd.f32 %v373_v7, %v372_v3  ;;  %v292_v9 = vadd.f32 %v291_v35, %v290_v61 }
 0x1ba   :  { %v375_v12 = vrot.slane %v374_v8, 2  ;;  %482 = vpush %v292_v9 }
 0x1bb   :  { %484 = vpush %v328_v59 }
 0x1bc   :  { %v376_v15 = vadd.f32 %v375_v12, %v374_v8  ;;  %486 = vpush %v341_v14 }
 0x1be   :  { %v377_v18 = vrot.slane %v376_v15, 1 }
 0x1c0   :  { %v378_v21 = vadd.f32 %v377_v18, %v376_v15 }
 0x1c2   :  { %488 = vpush %v378_v21 }
 0x1c3   :  { %490 = vpush %v414_v22 }
 0x1c4   :  { %492 = vpush %v427_v17  ;;  %s473_s0 = spop %472 }
 0x1c5   :  { %s475_s4 = spop %474  ;;  %v172_v24 = vstv %s473_s0 }
 0x1c6   :  { %v173_v25 = vsel %vm171_vm8, %v172_v24, 0.0  ;;  %v175_v26 = vstv %s475_s4 }
 0x1c7   :  { %v176_v28 = vsel %vm174_vm10, %v175_v26, %v173_v25 }
 0x1e3   :  { %s477_s9 = spop %476 }
 0x1e4   :  { %s479_s10 = spop %478  ;;  %v208_v33 = vstv %s477_s9 }
 0x1e5   :  { %s481_s11 = spop %480  ;;  %v258_v27 = vstv %s479_s10 }
 0x1e6   :  { %v259_v29 = vsel %vm257_vm11, %v258_v27, %v176_v28  ;;  %v261_v30 = vstv %s481_s11 }
 0x1e7   :  { %v262_v32 = vsel %vm260_vm12, %v261_v30, %v259_v29 }
 0x1eb   :  { %s483_s12 = spop %482 }
 0x1ec   :  { %s485_s13 = spop %484  ;;  %v294_v13 = vstv %s483_s12 }
 0x1ed   :  { %v344_v31 = vstv %s485_s13  ;;  %s487_s14 = spop %486  ;;  %v295_v38 = vadd.f32 %v294_v13, %v208_v33 }
 0x1ee   :  { %v345_v34 = vsel %vm343_vm13, %v344_v31, %v262_v32  ;;  %v347_v36 = vstv %s487_s14 }
 0x1ef   :  { %v348_v40 = vsel %vm346_vm14, %v347_v36, %v345_v34 }
 0x1f3   :  { %s489_s15 = spop %488 }
 0x1f4   :  { %v380_v39 = vstv %s489_s15  ;;  %s491_s16 = spop %490 }
 0x1f5   :  { %v381_v41 = vadd.f32 %v380_v39, %v295_v38  ;;  %v430_v42 = vstv %s491_s16  ;;  %s493_s17 = spop %492 }
 0x1f6   :  { %v431_v43 = vsel %vm429_vm15, %v430_v42, %v348_v40  ;;  %v433_v44 = vstv %s493_s17 }
 0x1f7   :  { %v434_v45 = vsel %vm432_vm0, %v433_v44, %v431_v43 }
 0x1f8   :  { %v436_v19 = vsel %vm435_vm1, %v381_v41, %v434_v45 }
 0x1f9   :  { %v439_v46 = vsel %vm438_vm2, %v436_v19, 0.0 }
 0x1fa   :  { %441 = vst [vmem:[#allocation8] sm:$0xff] %v439_v46 }
 0x1fb   :  { %452 = dma.vmem_to_hbm [thread:$0]  %s448_s19, 128, %s450_s22, [#allocation4]  }
 0x1fc   :  { %630 = dma.done.wait [#allocation4], 128  }
 0x1fd   :  { %631 = vsyncadd [#allocation4], 4294967168 }
 0x1fe   :  { %457 = vsyncpa [#allocation3], 1 }
 0x1ff   :  { %458 = vsyncpa [#allocation6], 1 }
 0x200   :  { %459 = vsyncpa [#allocation4], 1 }

</bundles_post_ra>
